<compile_context>
chip_gen: v6e
topology: v6e:2x2x1
jax: 0.10.0
libtpu: 0.0.40
codegen_flags: <defaults>
</compile_context>

<pallas_src>
import functools

import jax
import jax.numpy as jnp
from jax.experimental import pallas as pl
from jax.experimental.pallas import tpu as pltpu

NUM_KNOTS = 10
_LANES = 128
_MAX_ROW_TILE = 1024  # 1024 rows x 128 lanes x 4 B = 512 KiB per f32 block


def _sublane_multiple(dtype):
    # f32 -> 8, bf16 -> 16, int8/fp8 -> 32 (second-minor tiling requirement)
    itemsize = jnp.dtype(dtype).itemsize
    return 8 * max(1, 4 // max(1, itemsize))


def _spline_kernel(knots_ref, coef_ref, x_ref, o_ref, *, num_knots):
    # knots_ref / coef_ref: SMEM (num_knots,) float32 scalars
    # x_ref / o_ref: VMEM (row_tile, 128) tiles in the caller's dtype
    x = jnp.clip(x_ref[...].astype(jnp.float32), -1.0, 1.0)
    # num_knots is small & static -> unrolled elementwise VPU loop
    acc = coef_ref[0] * jnp.abs(x - knots_ref[0])
    for i in range(1, num_knots):
        acc += coef_ref[i] * jnp.abs(x - knots_ref[i])
    o_ref[...] = acc.astype(o_ref.dtype)


def spline_activation(x, knots, coefficients):
    """Pallas implementation of SplineActivation.forward.

    x: any shape (e.g. NCHW), any float dtype.
    knots, coefficients: (num_knots,) learnable parameters.
    """
    num_knots = knots.shape[0]
    orig_shape = x.shape
    dtype = x.dtype

    n = x.size
    sub_mult = _sublane_multiple(dtype)
    tile_elems = sub_mult * _LANES

    xf = x.reshape(-1)
    padded = (n % tile_elems) != 0
    if padded:
        # Pad only up to one (sublane, 128) tile (<= a few KiB of extra traffic).
        n_pad = pl.cdiv(n, tile_elems) * tile_elems
        xf = jnp.pad(xf, (0, n_pad - n))
    else:
        n_pad = n  # fast path: no pad copy, reshape is layout-free

    n_rows = n_pad // _LANES  # always a multiple of sub_mult
    x2d = xf.reshape(n_rows, _LANES)

    # Block size: up to ~512 KiB per block, but keep the grid length >= 2 when
    # the input allows it so the "parallel" axis can use both TensorCores.
    if n_rows <= sub_mult:
        row_tile = n_rows
    else:
        half = pl.cdiv(n_rows, 2)
        row_tile = min(_MAX_ROW_TILE,
                       ((half + sub_mult - 1) // sub_mult) * sub_mult)
    grid = (pl.cdiv(n_rows, row_tile),)  # ragged last block is fine (elementwise)

    kernel = functools.partial(_spline_kernel, num_knots=num_knots)

    out2d = pl.pallas_call(
        kernel,
        out_shape=jax.ShapeDtypeStruct((n_rows, _LANES), dtype),
        grid=grid,
        in_specs=[
            pl.BlockSpec(memory_space=pltpu.SMEM),  # knots
            pl.BlockSpec(memory_space=pltpu.SMEM),  # coefficients
            pl.BlockSpec((row_tile, _LANES), lambda i: (i, 0)),
        ],
        out_specs=pl.BlockSpec((row_tile, _LANES), lambda i: (i, 0)),
        compiler_params=pltpu.CompilerParams(
            dimension_semantics=("parallel",)
        ),
    )(knots.astype(jnp.float32), coefficients.astype(jnp.float32), x2d)

    out = out2d.reshape(-1)
    if padded:
        out = out[:n]
    return out.reshape(orig_shape)


def spline_activation_ref(x, knots, coefficients):
    xc = jnp.clip(x, -1.0, 1.0)
    acc = jnp.zeros_like(xc)
    for i in range(knots.shape[0]):
        acc += coefficients[i] * jnp.abs(xc - knots[i])
    return acc


if __name__ == "__main__":
    key = jax.random.PRNGKey(0)
    k_x, k_c = jax.random.split(key)

    # Input: NCHW, small shapes.
    x = jax.random.normal(k_x, (2, 4, 16, 16), dtype=jnp.float32) * 2.0

    # Parameters (deterministic, in-script). knots = linspace(-1, 1, num_knots)
    # as in the module; coefficients are zeros in the module's __init__, but we
    # use deterministic random values so the kernel computes something nontrivial.
    knots = jnp.linspace(-1.0, 1.0, NUM_KNOTS).astype(jnp.float32)
    coefficients = jax.random.normal(k_c, (NUM_KNOTS,), dtype=jnp.float32)

    out = spline_activation(x, knots, coefficients)
    out = jax.block_until_ready(out)

    ref = spline_activation_ref(x, knots, coefficients)
    assert out.shape == x.shape and out.dtype == x.dtype
    assert jnp.allclose(out, ref, atol=1e-5, rtol=1e-5), "mismatch vs reference"

    print("KERNEL_OK")
</pallas_src>

<mosaic_0001>
module attributes {stable_mosaic.version = 11 : i64} {
  func.func @_spline_kernel(%arg0: i32, %arg1: memref<10xf32, #tpu.memory_space<smem>>, %arg2: memref<10xf32, #tpu.memory_space<smem>>, %arg3: memref<8x128xf32, #tpu.memory_space<vmem>>, %arg4: memref<8x128xf32, #tpu.memory_space<vmem>>) attributes {dimension_semantics = [#tpu.dimension_semantics<parallel>], iteration_bounds = array<i64: 2>, scalar_prefetch = 0 : i64, scratch_operands = 0 : i64, tpu.core_type = #tpu.core_type<tc>, window_params = [{transform_indices = @transform_0, window_bounds = array<i64: 10>}, {transform_indices = @transform_1, window_bounds = array<i64: 10>}, {transform_indices = @transform_2, window_bounds = array<i64: 8, 128>}, {transform_indices = @transform_3, window_bounds = array<i64: 8, 128>}]} {
    %c0 = arith.constant 0 : index
    %c0_0 = arith.constant 0 : index
    %0 = vector.load %arg3[%c0, %c0_0] : memref<8x128xf32, #tpu.memory_space<vmem>>, vector<8x128xf32>
    %cst = arith.constant -1.000000e+00 : f32
    %cst_1 = arith.constant 1.000000e+00 : f32
    %1 = vector.broadcast %cst : f32 to vector<8x128xf32>
    %2 = arith.maximumf %1, %0 : vector<8x128xf32>
    %3 = vector.broadcast %cst_1 : f32 to vector<8x128xf32>
    %4 = arith.minimumf %3, %2 : vector<8x128xf32>
    %c0_2 = arith.constant 0 : index
    %5 = memref.load %arg2[%c0_2] : memref<10xf32, #tpu.memory_space<smem>>
    %c0_3 = arith.constant 0 : index
    %6 = memref.load %arg1[%c0_3] : memref<10xf32, #tpu.memory_space<smem>>
    %7 = vector.broadcast %6 : f32 to vector<8x128xf32>
    %8 = arith.subf %4, %7 : vector<8x128xf32>
    %9 = math.absf %8 : vector<8x128xf32>
    %10 = vector.broadcast %5 : f32 to vector<8x128xf32>
    %11 = arith.mulf %10, %9 : vector<8x128xf32>
    %c1 = arith.constant 1 : index
    %12 = memref.load %arg2[%c1] : memref<10xf32, #tpu.memory_space<smem>>
    %c1_4 = arith.constant 1 : index
    %13 = memref.load %arg1[%c1_4] : memref<10xf32, #tpu.memory_space<smem>>
    %14 = vector.broadcast %13 : f32 to vector<8x128xf32>
    %15 = arith.subf %4, %14 : vector<8x128xf32>
    %16 = math.absf %15 : vector<8x128xf32>
    %17 = vector.broadcast %12 : f32 to vector<8x128xf32>
    %18 = arith.mulf %17, %16 : vector<8x128xf32>
    %19 = arith.addf %11, %18 : vector<8x128xf32>
    %c2 = arith.constant 2 : index
    %20 = memref.load %arg2[%c2] : memref<10xf32, #tpu.memory_space<smem>>
    %c2_5 = arith.constant 2 : index
    %21 = memref.load %arg1[%c2_5] : memref<10xf32, #tpu.memory_space<smem>>
    %22 = vector.broadcast %21 : f32 to vector<8x128xf32>
    %23 = arith.subf %4, %22 : vector<8x128xf32>
    %24 = math.absf %23 : vector<8x128xf32>
    %25 = vector.broadcast %20 : f32 to vector<8x128xf32>
    %26 = arith.mulf %25, %24 : vector<8x128xf32>
    %27 = arith.addf %19, %26 : vector<8x128xf32>
    %c3 = arith.constant 3 : index
    %28 = memref.load %arg2[%c3] : memref<10xf32, #tpu.memory_space<smem>>
    %c3_6 = arith.constant 3 : index
    %29 = memref.load %arg1[%c3_6] : memref<10xf32, #tpu.memory_space<smem>>
    %30 = vector.broadcast %29 : f32 to vector<8x128xf32>
    %31 = arith.subf %4, %30 : vector<8x128xf32>
    %32 = math.absf %31 : vector<8x128xf32>
    %33 = vector.broadcast %28 : f32 to vector<8x128xf32>
    %34 = arith.mulf %33, %32 : vector<8x128xf32>
    %35 = arith.addf %27, %34 : vector<8x128xf32>
    %c4 = arith.constant 4 : index
    %36 = memref.load %arg2[%c4] : memref<10xf32, #tpu.memory_space<smem>>
    %c4_7 = arith.constant 4 : index
    %37 = memref.load %arg1[%c4_7] : memref<10xf32, #tpu.memory_space<smem>>
    %38 = vector.broadcast %37 : f32 to vector<8x128xf32>
    %39 = arith.subf %4, %38 : vector<8x128xf32>
    %40 = math.absf %39 : vector<8x128xf32>
    %41 = vector.broadcast %36 : f32 to vector<8x128xf32>
    %42 = arith.mulf %41, %40 : vector<8x128xf32>
    %43 = arith.addf %35, %42 : vector<8x128xf32>
    %c5 = arith.constant 5 : index
    %44 = memref.load %arg2[%c5] : memref<10xf32, #tpu.memory_space<smem>>
    %c5_8 = arith.constant 5 : index
    %45 = memref.load %arg1[%c5_8] : memref<10xf32, #tpu.memory_space<smem>>
    %46 = vector.broadcast %45 : f32 to vector<8x128xf32>
    %47 = arith.subf %4, %46 : vector<8x128xf32>
    %48 = math.absf %47 : vector<8x128xf32>
    %49 = vector.broadcast %44 : f32 to vector<8x128xf32>
    %50 = arith.mulf %49, %48 : vector<8x128xf32>
    %51 = arith.addf %43, %50 : vector<8x128xf32>
    %c6 = arith.constant 6 : index
    %52 = memref.load %arg2[%c6] : memref<10xf32, #tpu.memory_space<smem>>
    %c6_9 = arith.constant 6 : index
    %53 = memref.load %arg1[%c6_9] : memref<10xf32, #tpu.memory_space<smem>>
    %54 = vector.broadcast %53 : f32 to vector<8x128xf32>
    %55 = arith.subf %4, %54 : vector<8x128xf32>
    %56 = math.absf %55 : vector<8x128xf32>
    %57 = vector.broadcast %52 : f32 to vector<8x128xf32>
    %58 = arith.mulf %57, %56 : vector<8x128xf32>
    %59 = arith.addf %51, %58 : vector<8x128xf32>
    %c7 = arith.constant 7 : index
    %60 = memref.load %arg2[%c7] : memref<10xf32, #tpu.memory_space<smem>>
    %c7_10 = arith.constant 7 : index
    %61 = memref.load %arg1[%c7_10] : memref<10xf32, #tpu.memory_space<smem>>
    %62 = vector.broadcast %61 : f32 to vector<8x128xf32>
    %63 = arith.subf %4, %62 : vector<8x128xf32>
    %64 = math.absf %63 : vector<8x128xf32>
    %65 = vector.broadcast %60 : f32 to vector<8x128xf32>
    %66 = arith.mulf %65, %64 : vector<8x128xf32>
    %67 = arith.addf %59, %66 : vector<8x128xf32>
    %c8 = arith.constant 8 : index
    %68 = memref.load %arg2[%c8] : memref<10xf32, #tpu.memory_space<smem>>
    %c8_11 = arith.constant 8 : index
    %69 = memref.load %arg1[%c8_11] : memref<10xf32, #tpu.memory_space<smem>>
    %70 = vector.broadcast %69 : f32 to vector<8x128xf32>
    %71 = arith.subf %4, %70 : vector<8x128xf32>
    %72 = math.absf %71 : vector<8x128xf32>
    %73 = vector.broadcast %68 : f32 to vector<8x128xf32>
    %74 = arith.mulf %73, %72 : vector<8x128xf32>
    %75 = arith.addf %67, %74 : vector<8x128xf32>
    %c9 = arith.constant 9 : index
    %76 = memref.load %arg2[%c9] : memref<10xf32, #tpu.memory_space<smem>>
    %c9_12 = arith.constant 9 : index
    %77 = memref.load %arg1[%c9_12] : memref<10xf32, #tpu.memory_space<smem>>
    %78 = vector.broadcast %77 : f32 to vector<8x128xf32>
    %79 = arith.subf %4, %78 : vector<8x128xf32>
    %80 = math.absf %79 : vector<8x128xf32>
    %81 = vector.broadcast %76 : f32 to vector<8x128xf32>
    %82 = arith.mulf %81, %80 : vector<8x128xf32>
    %83 = arith.addf %75, %82 : vector<8x128xf32>
    %c0_13 = arith.constant 0 : index
    %c0_14 = arith.constant 0 : index
    %84 = vector.load %arg4[%c0_13, %c0_14] : memref<8x128xf32, #tpu.memory_space<vmem>>, vector<8x128xf32>
    tpu.vector_store %arg4[%c0_13, %c0_14], %83 {strides = array<i32>} : memref<8x128xf32, #tpu.memory_space<vmem>>, vector<8x128xf32>,
    return
  }
  func.func @transform_0(%arg0: i32) -> i32 {
    %c0_i32 = arith.constant 0 : i32
    %c0_i32_0 = arith.constant 0 : i32
    return %c0_i32 : i32
  }
  func.func @transform_1(%arg0: i32) -> i32 {
    %c0_i32 = arith.constant 0 : i32
    %c0_i32_0 = arith.constant 0 : i32
    return %c0_i32 : i32
  }
  func.func @transform_2(%arg0: i32) -> (i32, i32) {
    %c0_i32 = arith.constant 0 : i32
    %c0_i32_0 = arith.constant 0 : i32
    return %arg0, %c0_i32 : i32, i32
  }
  func.func @transform_3(%arg0: i32) -> (i32, i32) {
    %c0_i32 = arith.constant 0 : i32
    %c0_i32_0 = arith.constant 0 : i32
    return %arg0, %c0_i32 : i32, i32
  }
}

</mosaic_0001>

<bundles_post_ra>
// kernel: tpu_custom_call.1
= control target key start
LH: loop header
LB: loop body
LE: loop exit
PB: predicated region body
PF: predicated region fallthrough
CT: control target
= control target key end

     0   :  { %8 = vsyncpa [#allocation5], 0  ;;  %s871_s0 = inlined_call_operand.hbm [shape: f32[10], index: 0, kind: input, shape index: {}]   ;;  %s872_s1 = inlined_call_operand.vmem [shape: f32[10], index: 1, kind: input, shape index: {}]   ;;  %s873_s2 = inlined_call_operand.hbm [shape: f32[16,128], index: 2, kind: input, shape index: {}]   ;;  %s874_s3 = inlined_call_operand.hbm [shape: f32[16,128], index: 3, kind: output, shape index: {}]  }
   0x1   :  { %9 = vsyncpa [#allocation6], 0 }
   0x2   :  { %10 = vsyncpa [#allocation3], 0 }
   0x3   :  { %12 = vsyncpa [#allocation3 + $0x1], 0 }
   0x4   :  { %13 = vsyncpa [#allocation4], 0 }
   0x5   :  { %15 = vsyncpa [#allocation4 + $0x1], 0  ;;  %s656_s12 = smov 0   ;;  %s658_s13 = smov 0  }
   0x6   :  { %s660_s14 = smov 0   ;;  %s662_s15 = smov 0  }
   0x7 LB: > { %s677_s16 = sadd.s32 4294967295, %s630_s15   ;;  %s402_s17 = sadd.s32 4294967294, %s630_s15   ;;  %s630_s15 = sphi %s662_s15, %s898_s15   ;;  %s626_s14 = sphi %s660_s14, %s897_s14   ;;  %s622_s13 = sphi %s658_s13, %s896_s13   ;;  %s618_s12 = sphi %s656_s12, %s895_s12  }
   0x8   : > { %p83_p0 = scmp.ne.s32.totalorder %s622_s13, %s618_s12  ;;  %p875_p1 = scmp.eq.s32.totalorder %s677_s16, 0 }
   0x9   : > { %p107_p2 = scmp.eq.s32.totalorder %s677_s16, 1  ;;  %p113_p3 = scmp.eq.s32.totalorder %s402_s17, 1 }
   0xa   : > { %p686_p4 = por %p875_p1, %p83_p0  ;;  %p403_p5 = scmp.ge.s32.totalorder %s630_s15, 1 }
   0xb   : > { %p691_p6 = por %p113_p3, %p83_p0  ;;  %p120_p7 = scmp.lt.s32.totalorder %s630_s15, 3 }
   0xc   : > { %s879_s18 = scalar_select %p686_p4, 1, 0 }
   0xd   : > { %s880_s19 = scalar_select %p691_p6, 1, 0 }
   0xe   : > { %p696_p8 = pnand %p403_p5, %p120_p7  ;;  %s142_s23 = sshll.u32 %s872_s1, 4  ;;  %s143_s23 = int_to_ptr.vmem [resolvable:$true] %s142_s23 }
   0xf   : > { %s707_s24 = sadd.s32 1, %s630_s15   ;;  %s70_s27 = sadd.s32 1, %s626_s14 }
  0x10   : > { %s881_s20 = scalar_select %p696_p8, 1, 0 }
  0x11   : > { %p449_p10 = pneg %p696_p8  ;;  %s67_s26 = ssub.s32 %s630_s15, %s707_s24 }
  0x12   : > { %p718_p12 = scmp.eq.s32.totalorder %s67_s26, 0  ;;  %s632_s29 = smov [#allocation2]  }
  0x13   : > { %p711_p11 = pnand %p449_p10, %p875_p1  ;;  %s515_s5 = scalar_lea.vmem %s143_s23, 16 }
  0x14   : > { %p516_p13 = scmp.ne.s32.totalorder %s143_s23, %s515_s5  ;;  %p523_p7 = scmp.lt.s32.totalorder %s143_s23, %s143_s23 }
  0x15   : > { %452 = dma.hbm_to_smem (!%p711_p11), %s871_s0, 16, %s632_s29, [#allocation5]  }
  0x16   : > { %p517_p0 = pneg %p711_p11  ;;  %p524_p10 = scmp.lt.s32.totalorder %s515_s5, %s515_s5 }
  0x18   : > { %p518_p3 = pnand %p517_p0, %p516_p13  ;;  %p525_p9 = por %p524_p10, %p523_p7 }
  0x1a   : > { %p519_p5 = pneg %p518_p3 }
  0x1c   : > { %p526_p1 = pnand %p525_p9, %p519_p5 }
  0x1e   : > { %529 = shalt.err (!%p526_p1)
}
  0x1f   : > { %s633_s6 = smov [#allocation7]   ;;  %p77_p13 = scmp.ne.s32.totalorder %s626_s14, %s622_s13 }
  0x20   : > { %455 = dma.vmem_to_smem (!%p711_p11), %s143_s23, 16, %s633_s6, [#allocation6]  }
  0x21   : > { %s734_s7 = scalar_select %p718_p12, %s626_s14, %s70_s27  }
  0x22   : > { %p78_p0 = scmp.eq.s32.totalorder %s630_s15, 0  ;;  %p466_p9 = scmp.lt.s32.totalorder %s630_s15, 2 }
  0x23   : > { %s153_s8 = sand.u32 1, %s626_s14   ;;  %p743_p3 = por %p107_p2, %p77_p13 }
  0x24   : > { %p79_p1 = por %p78_p0, %p77_p13  ;;  %s407_s10 = sshll.u32 %s153_s8, 3 }
  0x25   : > { %s884_s9 = scalar_select %p743_p3, 1, 0 }
  0x26   : > { %s408_s11 = sshll.u32 %s630_s15, 7  ;;  %s157_s23 = scalar_lea.vmem [#allocation8], %s407_s10 }
  0x27   : > { %s751_s22 = scalar_lea.hbm %s873_s2, %s408_s11  ;;  %s164_s25 = sshll.u32 %s157_s23, 4  ;;  %s165_s25 = int_to_ptr.vmem [resolvable:$true] %s164_s25 }
  0x28   : > { %p753_p11 = pnand %p466_p9, %p79_p1  ;;  %s154_s27 = scalar_lea.sflag [#allocation3], %s153_s8 }
  0x29   : > { %s530_s28 = scalar_lea.hbm %s751_s22, 128  ;;  %s535_s4 = scalar_lea.hbm %s873_s2, 256 }
  0x2a   : > { %p531_p2 = scmp.ne.s32.totalorder %s751_s22, %s530_s28  ;;  %p532_p12 = pneg %p753_p11 }
  0x2b   : > { %p536_p10 = scmp.lt.s32.totalorder %s751_s22, %s873_s2  ;;  %p537_p13 = scmp.lt.s32.totalorder %s535_s4, %s530_s28 }
  0x2c   : > { %p533_p5 = pnand %p532_p12, %p531_p2 }
  0x2d   : > { %p538_p0 = por %p537_p13, %p536_p10 }
  0x2e   : > { %p534_p7 = pneg %p533_p5 }
  0x30   : > { %p539_p9 = pnand %p538_p0, %p534_p7 }
  0x32   : > { %542 = shalt.err (!%p539_p9)
}
  0x33   : > { %s543_s10 = scalar_lea.vmem %s165_s25, 128  ;;  %s634_s8 = smov [#allocation8]  }
  0x34   : > { %p544_p1 = scmp.ne.s32.totalorder %s165_s25, %s543_s10  ;;  %s548_s11 = sshll.u32 %s634_s8, 4  ;;  %s549_s11 = int_to_ptr.vmem [resolvable:$false] %s548_s11 }
  0x35   : > { %s550_s17 = scalar_lea.vmem %s549_s11, 256  ;;  %p551_p2 = scmp.lt.s32.totalorder %s165_s25, %s549_s11 }
  0x36   : > { %p546_p6 = pnand %p544_p1, %p532_p12  ;;  %p552_p5 = scmp.lt.s32.totalorder %s550_s17, %s543_s10 }
  0x38   : > { %p547_p3 = pneg %p546_p6  ;;  %p553_p4 = por %p552_p5, %p551_p2 }
  0x3a   : > { %p554_p8 = pnand %p553_p4, %p547_p3 }
  0x3c   : > { %557 = shalt.err (!%p554_p8)
}
  0x3d   : > { %459 = dma.hbm_to_vmem [thread:$0]  (!%p753_p11), %s751_s22, 128, %s165_s25, %s154_s27  }
  0x3e   : > { %p886_p7 = scmp.ne.s32.totalorder %s881_s20, 0 }
  0x3f   : > { %p887_p10 = scmp.eq.s32.totalorder (!%p886_p7), %s677_s16, 0 }
  0x40   : > { %173 = sbr.rel (%p886_p7) target bundleno = 127 (0x7f), region = 32 }
  0x45   : > { %601 = dma.done.wait (%p887_p10), [#allocation5], 16   ;;  %p888_p6 = pmov %p887_p10 }
  0x47   : > { %603 = vsyncadd (%p888_p6), [#allocation5], 4294967280  ;;  %p889_p12 = pmov %p888_p6 }
  0x48   : > { %p890_p13 = pmov %p888_p6 }
  0x49   : > { %605 = dma.done.wait (%p889_p12), [#allocation6], 16  }
  0x4a   : > { %607 = vsyncadd (%p890_p13), [#allocation6], 4294967280  ;;  %s782_s21 = sand.u32 1, %s622_s13   ;;  %p891_p4 = scmp.ne.s32.totalorder %s879_s18, 0 }
  0x4b   : > { %s412_s20 = sshll.u32 %s782_s21, 3  ;;  %s184_s22 = scalar_lea.sflag [#allocation3], %s782_s21 }
  0x4c   : > { %s187_s23 = scalar_lea.vmem [#allocation8], %s412_s20 }
  0x4d   : > { %609 = dma.done.wait (%p891_p4), %s184_s22, 128  }
  0x4e   : > { %611 = vsyncadd (%p891_p4), %s184_s22, 4294967168 }
  0x4f   : > { %192 = sfence }
  0x50   : > { %s214_s25 = sld [smem:[#allocation7]]  ;;  %v211_v0 = vld [vmem:[%s187_s23] sm:$0xff]  ;;  %p892_p3 = scmp.ne.s32.totalorder %s884_s9, 0 }
  0x51   : > { %s215_s26 = sld [smem:[#allocation2]]  ;;  %v792_v1 = vclamps-f32 %v211_v0, 1.0 }
  0x52   : > { %s415_s27 = sld [smem:[#allocation7 + $0x1]] }
  0x53   : > { %s416_s28 = sld [smem:[#allocation2 + $0x1]] }
  0x54   : > { %s794_s29 = sld [smem:[#allocation7 + $0x2]] }
  0x55   : > { %s418_s30 = sld [smem:[#allocation2 + $0x2]] }
  0x56   : > { %s796_s4 = sld [smem:[#allocation7 + $0x3]]  ;;  %v219_v4 = vstv %s214_s25 }
  0x57   : > { %v216_v2 = vstv %s215_s26  ;;  %s420_s5 = sld [smem:[#allocation2 + $0x3]] }
  0x58   : > { %v217_v3 = vsub.f32 %v792_v1, %v216_v2  ;;  %s799_s18 = sld [smem:[#allocation7 + $0x4]]  ;;  %v226_v8 = vstv %s415_s27 }
  0x59   : > { %v223_v5 = vstv %s416_s28  ;;  %s422_s6 = sld [smem:[#allocation2 + $0x4]] }
  0x5a   : > { %v218_v6 = vand.u32 2147483647, %v217_v3  ;;  %v224_v7 = vsub.f32 %v792_v1, %v223_v5  ;;  %s802_s10 = sld [smem:[#allocation7 + $0x5]]  ;;  %v234_v13 = vstv %s794_s29  ;;  %s210_s29 = scalar_lea.vmem [#allocation9], %s412_s20 }
  0x5b   : > { %v231_v9 = vstv %s418_s30  ;;  %s424_s8 = sld [smem:[#allocation2 + $0x5]]  ;;  %s308_s30 = sshll.u32 %s210_s29, 4  ;;  %s831_s30 = int_to_ptr.vmem [resolvable:$true] %s308_s30 }
  0x5c   : > { %v220_v10 = vmul.f32 %v219_v4, %v218_v6  ;;  %v225_v11 = vand.u32 2147483647, %v224_v7  ;;  %v232_v12 = vsub.f32 %v792_v1, %v231_v9  ;;  %s805_s11 = sld [smem:[#allocation7 + $0x6]]  ;;  %v242_v18 = vstv %s796_s4  ;;  %s434_s4 = sshll.u32 %s677_s16, 7 }
  0x5d   : > { %v239_v14 = vstv %s420_s5  ;;  %s426_s17 = sld [smem:[#allocation2 + $0x6]]  ;;  %s635_s16 = smov [#allocation9]  }
  0x5e   : > { %v227_v15 = vmul.f32 %v226_v8, %v225_v11  ;;  %v233_v16 = vand.u32 2147483647, %v232_v12  ;;  %v240_v17 = vsub.f32 %v792_v1, %v239_v14  ;;  %s809_s22 = sld [smem:[#allocation7 + $0x7]]  ;;  %v250_v24 = vstv %s799_s18  ;;  %s562_s20 = sshll.u32 %s635_s16, 4  ;;  %s563_s20 = int_to_ptr.vmem [resolvable:$false] %s562_s20 }
  0x5f   : > { %v247_v19 = vstv %s422_s6  ;;  %s428_s23 = sld [smem:[#allocation2 + $0x7]]  ;;  %s306_s6 = scalar_lea.hbm %s874_s3, %s434_s4 }
  0x60   : > { %v228_v20 = vadd.f32 %v227_v15, %v220_v10  ;;  %v235_v21 = vmul.f32 %v234_v13, %v233_v16  ;;  %v241_v22 = vand.u32 2147483647, %v240_v17  ;;  %v248_v23 = vsub.f32 %v792_v1, %v247_v19  ;;  %s813_s25 = sld [smem:[#allocation7 + $0x8]]  ;;  %p565_p9 = scmp.lt.s32.totalorder %s831_s30, %s563_s20 }
  0x61   : > { %v255_v25 = vstv %s424_s8  ;;  %s430_s26 = sld [smem:[#allocation2 + $0x8]]  ;;  %v258_v30 = vstv %s802_s10  ;;  %s295_s10 = scalar_lea.sflag [#allocation4], %s782_s21 }
  0x62   : > { %v236_v26 = vadd.f32 %v235_v21, %v228_v20  ;;  %v243_v27 = vmul.f32 %v242_v18, %v241_v22  ;;  %v249_v28 = vand.u32 2147483647, %v248_v23  ;;  %v256_v29 = vsub.f32 %v792_v1, %v255_v25  ;;  %s817_s27 = sld [smem:[#allocation7 + $0x9]]  ;;  %s558_s8 = scalar_lea.vmem %s831_s30, 128 }
  0x63   : > { %v263_v31 = vstv %s426_s17  ;;  %s432_s28 = sld [smem:[#allocation2 + $0x9]]  ;;  %v266_v36 = vstv %s805_s11  ;;  %p559_p8 = scmp.ne.s32.totalorder %s831_s30, %s558_s8 }
  0x64   : > { %v244_v32 = vadd.f32 %v243_v27, %v236_v26  ;;  %v251_v33 = vmul.f32 %v250_v24, %v249_v28  ;;  %v257_v34 = vand.u32 2147483647, %v256_v29  ;;  %v264_v35 = vsub.f32 %v792_v1, %v263_v31  ;;  %s564_s11 = scalar_lea.vmem %s563_s20, 256 }
  0x65   : > { %v271_v37 = vstv %s428_s23  ;;  %v274_v42 = vstv %s809_s22  ;;  %p560_p11 = pnand %p559_p8, %p892_p3  ;;  %p566_p1 = scmp.lt.s32.totalorder %s564_s11, %s558_s8 }
  0x66   : > { %v252_v38 = vadd.f32 %v251_v33, %v244_v32  ;;  %v259_v39 = vmul.f32 %v258_v30, %v257_v34  ;;  %v265_v40 = vand.u32 2147483647, %v264_v35  ;;  %v272_v41 = vsub.f32 %v792_v1, %v271_v37 }
  0x67   : > { %v279_v43 = vstv %s430_s26  ;;  %v282_v48 = vstv %s813_s25  ;;  %p561_p0 = pneg %p560_p11  ;;  %p567_p2 = por %p566_p1, %p565_p9 }
  0x68   : > { %v260_v44 = vadd.f32 %v259_v39, %v252_v38  ;;  %v267_v45 = vmul.f32 %v266_v36, %v265_v40  ;;  %v273_v46 = vand.u32 2147483647, %v272_v41  ;;  %v280_v47 = vsub.f32 %v792_v1, %v279_v43 }
  0x69   : > { %v287_v49 = vstv %s432_s28  ;;  %v290_v54 = vstv %s817_s27  ;;  %p568_p5 = pnand %p567_p2, %p561_p0 }
  0x6a   : > { %v268_v50 = vadd.f32 %v267_v45, %v260_v44  ;;  %v275_v51 = vmul.f32 %v274_v42, %v273_v46  ;;  %v281_v52 = vand.u32 2147483647, %v280_v47  ;;  %v288_v53 = vsub.f32 %v792_v1, %v287_v49 }
  0x6c   : > { %v276_v55 = vadd.f32 %v275_v51, %v268_v50  ;;  %v283_v56 = vmul.f32 %v282_v48, %v281_v52  ;;  %v289_v57 = vand.u32 2147483647, %v288_v53 }
  0x6e   : > { %v284_v58 = vadd.f32 %v283_v56, %v276_v55  ;;  %v291_v59 = vmul.f32 %v290_v54, %v289_v57 }
  0x70   : > { %v292_v60 = vadd.f32 %v291_v59, %v284_v58 }
  0x72   : > { %293 = vst [vmem:[%s210_s29] sm:$0xff] %v292_v60 }
  0x73   : > { %571 = shalt.err (!%p568_p5)
}
  0x74   : > { %s572_s17 = scalar_lea.hbm %s306_s6, 128  ;;  %s576_s23 = scalar_lea.hbm %s874_s3, 256 }
  0x75   : > { %p573_p7 = scmp.ne.s32.totalorder %s306_s6, %s572_s17  ;;  %p577_p12 = scmp.lt.s32.totalorder %s306_s6, %s874_s3 }
  0x76   : > { %p578_p13 = scmp.lt.s32.totalorder %s576_s23, %s572_s17 }
  0x77   : > { %p574_p10 = pnand %p573_p7, %p892_p3 }
  0x78   : > { %p579_p4 = por %p578_p13, %p577_p12 }
  0x79   : > { %p575_p6 = pneg %p574_p10 }
  0x7b   : > { %p580_p8 = pnand %p579_p4, %p575_p6 }
  0x7d   : > { %583 = shalt.err (!%p580_p8)
}
  0x7e   : > { %447 = dma.vmem_to_hbm [thread:$0]  (%p892_p3), %s831_s30, 128, %s306_s6, %s295_s10  }
  0x7f PF: > { %s320_s27 = sand.u32 1, %s618_s12   ;;  %p893_p11 = scmp.ne.s32.totalorder %s880_s19, 0 }
  0x80   : > { %p894_p0 = scmp.ge.s32.totalorder %s630_s15, 2  ;;  %s321_s28 = scalar_lea.sflag [#allocation4], %s320_s27 }
  0x82   : > { %p461_p9 = pnand %p894_p0, %p893_p11 }
  0x84   : > { %p462_p1 = pneg %p461_p9 }
  0x86   : > { %613 = dma.done.wait (%p462_p1), %s321_s28, 128  }
  0x87   : > { %615 = vsyncadd (%p462_p1), %s321_s28, 4294967168  ;;  %p18_p2 = scmp.ge.s32.totalorder %s707_s24, 4   ;;  %s895_s12 = smov %s622_s13 }
  0x88   : > { %s896_s13 = smov %s626_s14  ;;  %s897_s14 = smov %s734_s7 }
  0x89   : > { %s898_s15 = smov %s707_s24  ;;  %20 = sbr.rel (!%p18_p2) target bundleno = 7 (0x7), region = 87 }
  0x8e   :  { %326 = vsyncpa [#allocation3], 1 }
  0x8f   :  { %328 = vsyncpa [#allocation3 + $0x1], 1 }
  0x90   :  { %329 = vsyncpa [#allocation4], 1 }
  0x91   :  { %331 = vsyncpa [#allocation4 + $0x1], 1 }
  0x92   :  { %332 = vsyncpa [#allocation5], 1 }
  0x93   :  { %334 = vsyncpa [#allocation5 + $0x1], 1 }
  0x94   :  { %335 = vsyncpa [#allocation6], 1 }
  0x95   :  { %337 = vsyncpa [#allocation6 + $0x1], 1 }

</bundles_post_ra>
